<compile_context>
chip_gen: v7x
topology: tpu7x:2x2x1
jax: 0.10.0
libtpu: 0.0.40
codegen_flags: <defaults>
</compile_context>

<pallas_src>
import functools

import jax
import jax.numpy as jnp
from jax.experimental import pallas as pl
from jax.experimental.pallas import tpu as pltpu


def _round_up(n: int, m: int) -> int:
    return ((n + m - 1) // m) * m


def _meta_mlp_kernel(x_ref, w1_ref, w2_ref, w3_ref, w4_ref, c_ref, out_ref,
                     *, sub, h1d, latd, h3d, h4d):
    """One batch tile.

    x_ref   : [TB, d_in] f32 activations (TB a multiple of `sub`)
    w1..w4  : bf16 [in, out] weights (VMEM-resident via constant index_map)
    c_ref   : [8, cw] f32 packed constants:
              row 0 = b1, 1 = b2, 2 = b3, 3 = b4, 4 = w5 row, 5 = [b5, 0, ...]
    out_ref : [TB, out_w] f32 lane-dense packed output:
              lanes [0, latd) = latent, lane latd = score, remaining lanes = 0
    """
    mm = w1_ref.dtype                      # bf16 MXU input dtype
    b1 = c_ref[0:1, :h1d]
    b2 = c_ref[1:2, :latd]
    b3 = c_ref[2:3, :h3d]
    b4 = c_ref[3:4, :h4d]
    w5 = c_ref[4:5, :h4d]
    b5 = c_ref[5:6, 0:1]

    out_w = out_ref.shape[1]
    pad_w = out_w - (latd + 1)
    n_sub = out_ref.shape[0] // sub        # static

    def body(s, carry):
        i0 = s * sub
        if not isinstance(i0, int):
            i0 = pl.multiple_of(i0, sub)
        x = x_ref[pl.ds(i0, sub), :]       # [sub, d_in] f32

        # ---- ConfigEncoder (Dropout(0.1) = identity at inference) ----
        h1 = jnp.dot(x.astype(mm), w1_ref[...],
                     preferred_element_type=jnp.float32) + b1
        h1 = jnp.maximum(h1, 0.0)
        lat = jnp.dot(h1.astype(mm), w2_ref[...],
                      preferred_element_type=jnp.float32) + b2
        lat = jnp.maximum(lat, 0.0)

        # ---- PerformancePredictor ----
        h3 = jnp.dot(lat.astype(mm), w3_ref[...],
                     preferred_element_type=jnp.float32) + b3
        h3 = jnp.maximum(h3, 0.0)
        h4 = jnp.dot(h3.astype(mm), w4_ref[...],
                     preferred_element_type=jnp.float32) + b4
        h4 = jnp.maximum(h4, 0.0)

        # Final [h4d, 1] projection: VPU multiply + row reduce (no N=1 MXU pass).
        score = jnp.sum(h4 * w5, axis=-1, keepdims=True) + b5

        # Lane-dense packed store: [latent | score | zero pad] -> full 128 lanes.
        pieces = [lat, score]
        if pad_w > 0:
            pieces.append(jnp.zeros((sub, pad_w), jnp.float32))
        out_ref[pl.ds(i0, sub), :] = jnp.concatenate(pieces, axis=-1)
        return carry

    if n_sub == 1:
        body(0, 0)
    else:
        # Real loop bounds the live range of each sub-tile's intermediates
        # (keeps vreg / compiler-scratch pressure flat as TB grows).
        jax.lax.fori_loop(0, n_sub, body, 0)


def meta_learning_forward(x, params, *, block_b: int = 2048, sub_rows: int = 256):
    """x: [B, d_in] float32.
    params: w1..w4 bf16 [in, out]; w5 f32 [1, h4d] (row); b1..b5 f32 [1, out].
    Returns (latent [B, latd] f32, score [B, 1] f32).

    block_b  : target batch-tile rows per grid step (HBM DMA granularity).
               1024-4096 is a good range on v5e/v6e; 2048-8192 on v7x.
    sub_rows : in-kernel sub-tile rows (keeps intermediates near-vreg).
    """
    B, d_in = x.shape
    h1d = params["w1"].shape[1]
    latd = params["w2"].shape[1]
    h3d = params["w3"].shape[1]
    h4d = params["w4"].shape[1]
    out_w = _round_up(latd + 1, 128)       # lane-dense packed output width

    # --- batch tiling -----------------------------------------------------
    sub = max(8, _round_up(min(sub_rows, block_b), 8))
    Bp8 = _round_up(B, 8)
    if Bp8 <= sub:
        sub = Bp8
        TB = Bp8
        Bp = Bp8
    else:
        tb_cap = _round_up(max(block_b, sub), sub)   # multiple of sub
        Bp = _round_up(Bp8, 2 * sub)                 # even number of sub-tiles
        TB = min(tb_cap, Bp // 2)                    # >= 2 grid steps (v7x megacore)
        Bp = _round_up(Bp, TB)
    if Bp != B:
        x = jnp.pad(x, ((0, Bp - B), (0, 0)))
    grid = (Bp // TB,)

    # --- pack all small f32 constants into one lane-dense slab ------------
    cw = _round_up(max(h1d, latd, h3d, h4d, 1), 128)
    consts = jnp.zeros((8, cw), jnp.float32)
    consts = consts.at[0, :h1d].set(params["b1"].reshape(-1).astype(jnp.float32))
    consts = consts.at[1, :latd].set(params["b2"].reshape(-1).astype(jnp.float32))
    consts = consts.at[2, :h3d].set(params["b3"].reshape(-1).astype(jnp.float32))
    consts = consts.at[3, :h4d].set(params["b4"].reshape(-1).astype(jnp.float32))
    consts = consts.at[4, :h4d].set(params["w5"].reshape(-1).astype(jnp.float32))
    consts = consts.at[5, 0].set(params["b5"].reshape(-1)[0].astype(jnp.float32))

    batch_map = lambda i: (i, 0)           # tile moves along the batch axis
    const_map = lambda i: (0, 0)           # weights stay VMEM-resident (no re-DMA)

    in_specs = [
        pl.BlockSpec((TB, d_in), batch_map),
        pl.BlockSpec(params["w1"].shape, const_map),
        pl.BlockSpec(params["w2"].shape, const_map),
        pl.BlockSpec(params["w3"].shape, const_map),
        pl.BlockSpec(params["w4"].shape, const_map),
        pl.BlockSpec(consts.shape, const_map),
    ]
    out_specs = pl.BlockSpec((TB, out_w), batch_map)

    # --- advisory cost estimate --------------------------------------------
    flops = 2 * Bp * (d_in * h1d + h1d * latd + latd * h3d + h3d * h4d + h4d)
    weight_bytes = sum(int(params[k].size) * params[k].dtype.itemsize
                       for k in ("w1", "w2", "w3", "w4")) + int(consts.size) * 4
    bytes_accessed = Bp * (d_in + out_w) * 4 + weight_bytes
    cost = pl.CostEstimate(flops=flops, transcendentals=0,
                           bytes_accessed=bytes_accessed)

    # --- VMEM budget: only raise the scoped limit for very large tiles -----
    vmem_est = (2 * TB * (d_in + out_w) * 4            # double-buffered x + out tiles
                + 2 * weight_bytes                      # resident weights
                + 8 * sub * max(h1d, h3d, out_w) * 4)   # per-sub-tile intermediates
    cp_kwargs = dict(dimension_semantics=("parallel",))
    if vmem_est > (12 << 20):              # would crowd v5e's 16 MiB scoped default
        cp_kwargs["vmem_limit_bytes"] = int(min(max(2 * vmem_est, 32 << 20), 48 << 20))

    kernel = functools.partial(_meta_mlp_kernel, sub=sub,
                               h1d=h1d, latd=latd, h3d=h3d, h4d=h4d)

    packed = pl.pallas_call(
        kernel,
        out_shape=jax.ShapeDtypeStruct((Bp, out_w), jnp.float32),
        grid=grid,
        in_specs=in_specs,
        out_specs=out_specs,
        compiler_params=pltpu.CompilerParams(**cp_kwargs),
        cost_estimate=cost,
    )(x, params["w1"], params["w2"], params["w3"], params["w4"], consts)

    # Padded rows carry garbage — always slice before exposing to consumers.
    latent = packed[:B, :latd]
    score = packed[:B, latd:latd + 1]
    return latent, score


def init_params(key, input_dimension, latent_dimension=64,
                encoder_hidden_dim=128, predictor_hidden_dim_1=128,
                predictor_hidden_dim_2=64, matmul_dtype=jnp.bfloat16):
    """PyTorch-Linear-style init U(-1/sqrt(fan_in), 1/sqrt(fan_in)).
    W1..W4 stored [in, out] in `matmul_dtype` (bf16 MXU weights);
    W5 stored as an f32 row [1, H2] (feeds a VPU reduction, not the MXU);
    biases stored f32 [1, out]. The K=input_dimension axis is intentionally
    NOT padded to 128 (kernel is HBM-bound; padding would inflate x traffic)."""
    dims = [
        ("w1", "b1", input_dimension, encoder_hidden_dim),
        ("w2", "b2", encoder_hidden_dim, latent_dimension),
        ("w3", "b3", latent_dimension, predictor_hidden_dim_1),
        ("w4", "b4", predictor_hidden_dim_1, predictor_hidden_dim_2),
        ("w5", "b5", predictor_hidden_dim_2, 1),
    ]
    params = {}
    for wname, bname, fan_in, fan_out in dims:
        key, kw, kb = jax.random.split(key, 3)
        bound = 1.0 / jnp.sqrt(jnp.float32(fan_in))
        w = jax.random.uniform(kw, (fan_in, fan_out), jnp.float32,
                               minval=-bound, maxval=bound)
        b = jax.random.uniform(kb, (1, fan_out), jnp.float32,
                               minval=-bound, maxval=bound)
        if wname == "w5":
            params[wname] = w.reshape(1, fan_in)       # f32 row for the VPU reduce
        else:
            params[wname] = w.astype(matmul_dtype)     # bf16 MXU weights
        params[bname] = b
    return params


def _reference_forward(x, params):
    """Plain-JAX f32 reference using the same (bf16-quantized) weight values."""
    w1 = params["w1"].astype(jnp.float32)
    w2 = params["w2"].astype(jnp.float32)
    w3 = params["w3"].astype(jnp.float32)
    w4 = params["w4"].astype(jnp.float32)
    h1 = jnp.maximum(x @ w1 + params["b1"], 0.0)
    lat = jnp.maximum(h1 @ w2 + params["b2"], 0.0)
    h3 = jnp.maximum(lat @ w3 + params["b3"], 0.0)
    h4 = jnp.maximum(h3 @ w4 + params["b4"], 0.0)
    score = jnp.sum(h4 * params["w5"], axis=-1, keepdims=True) + params["b5"]
    return lat, score


if __name__ == "__main__":
    key = jax.random.PRNGKey(0)
    key, kx = jax.random.split(key)

    B = 8
    INPUT_DIM = 32   # configuration-vector dimensionality

    x = jax.random.normal(kx, (B, INPUT_DIM), jnp.float32)
    params = init_params(key, INPUT_DIM)

    # Small batch: single tile, grid=(1,).
    latent, score = meta_learning_forward(x, params)
    jax.block_until_ready((latent, score))
    lat_ref, score_ref = _reference_forward(x, params)
    assert latent.shape == (B, 64) and score.shape == (B, 1)
    # bf16 MXU inputs with f32 accumulation: loose tolerance vs the f32 reference.
    assert jnp.allclose(latent, lat_ref, atol=3e-2, rtol=3e-2)
    assert jnp.allclose(score, score_ref, atol=3e-2, rtol=3e-2)

    # Larger batch: exercises batch padding, grid >= 2 (megacore path) and the
    # in-kernel sub-tile loop.
    key, kx2 = jax.random.split(key)
    B2 = 600
    x2 = jax.random.normal(kx2, (B2, INPUT_DIM), jnp.float32)
    latent2, score2 = meta_learning_forward(x2, params, block_b=2048, sub_rows=256)
    jax.block_until_ready((latent2, score2))
    lat_ref2, score_ref2 = _reference_forward(x2, params)
    assert latent2.shape == (B2, 64) and score2.shape == (B2, 1)
    assert jnp.allclose(latent2, lat_ref2, atol=3e-2, rtol=3e-2)
    assert jnp.allclose(score2, score_ref2, atol=3e-2, rtol=3e-2)

    print("KERNEL_OK")
</pallas_src>

<mosaic_0001>
module attributes {stable_mosaic.version = 11 : i64} {
  func.func @_meta_mlp_kernel(%arg0: i32, %arg1: memref<8x32xf32, #tpu.memory_space<vmem>>, %arg2: memref<32x128xbf16, #tpu.memory_space<vmem>>, %arg3: memref<128x64xbf16, #tpu.memory_space<vmem>>, %arg4: memref<64x128xbf16, #tpu.memory_space<vmem>>, %arg5: memref<128x64xbf16, #tpu.memory_space<vmem>>, %arg6: memref<8x128xf32, #tpu.memory_space<vmem>>, %arg7: memref<8x128xf32, #tpu.memory_space<vmem>>) attributes {dimension_semantics = [#tpu.dimension_semantics<parallel>], iteration_bounds = array<i64: 1>, scalar_prefetch = 0 : i64, scratch_operands = 0 : i64, tpu.core_type = #tpu.core_type<tc>, window_params = [{transform_indices = @transform_0, window_bounds = array<i64: 8, 32>}, {pipeline_mode = #tpu.pipeline_mode<synchronous>, transform_indices = @transform_1, window_bounds = array<i64: 32, 128>}, {pipeline_mode = #tpu.pipeline_mode<synchronous>, transform_indices = @transform_2, window_bounds = array<i64: 128, 64>}, {pipeline_mode = #tpu.pipeline_mode<synchronous>, transform_indices = @transform_3, window_bounds = array<i64: 64, 128>}, {pipeline_mode = #tpu.pipeline_mode<synchronous>, transform_indices = @transform_4, window_bounds = array<i64: 128, 64>}, {pipeline_mode = #tpu.pipeline_mode<synchronous>, transform_indices = @transform_5, window_bounds = array<i64: 8, 128>}, {transform_indices = @transform_6, window_bounds = array<i64: 8, 128>}]} {
    %c0 = arith.constant 0 : index
    %c0_0 = arith.constant 0 : index
    %0 = vector.load %arg6[%c0, %c0_0] : memref<8x128xf32, #tpu.memory_space<vmem>>, vector<1x128xf32>
    %c1 = arith.constant 1 : index
    %c0_1 = arith.constant 0 : index
    %1 = vector.load %arg6[%c1, %c0_1] : memref<8x128xf32, #tpu.memory_space<vmem>>, vector<1x64xf32>
    %c2 = arith.constant 2 : index
    %c0_2 = arith.constant 0 : index
    %2 = vector.load %arg6[%c2, %c0_2] : memref<8x128xf32, #tpu.memory_space<vmem>>, vector<1x128xf32>
    %c3 = arith.constant 3 : index
    %c0_3 = arith.constant 0 : index
    %3 = vector.load %arg6[%c3, %c0_3] : memref<8x128xf32, #tpu.memory_space<vmem>>, vector<1x64xf32>
    %c4 = arith.constant 4 : index
    %c0_4 = arith.constant 0 : index
    %4 = vector.load %arg6[%c4, %c0_4] : memref<8x128xf32, #tpu.memory_space<vmem>>, vector<1x64xf32>
    %c5 = arith.constant 5 : index
    %c0_5 = arith.constant 0 : index
    %5 = vector.load %arg6[%c5, %c0_5] : memref<8x128xf32, #tpu.memory_space<vmem>>, vector<1x1xf32>
    %c0_6 = arith.constant 0 : index
    %c0_7 = arith.constant 0 : index
    %6 = vector.load %arg1[%c0_6, %c0_7] : memref<8x32xf32, #tpu.memory_space<vmem>>, vector<8x32xf32>
    %7 = arith.truncf %6 : vector<8x32xf32> to vector<8x32xbf16>
    %c0_8 = arith.constant 0 : index
    %c0_9 = arith.constant 0 : index
    %8 = vector.load %arg2[%c0_8, %c0_9] : memref<32x128xbf16, #tpu.memory_space<vmem>>, vector<32x128xbf16>
    %cst = arith.constant dense<0.000000e+00> : vector<8x128xf32>
    %9 = tpu.matmul %7, %8, %cst {dimension_numbers = #tpu.dot_dimension_numbers<[1], [0], [0], [1], [0, 0, 1, 1], [], []>} : vector<8x32xbf16>, vector<32x128xbf16>, vector<8x128xf32> -> vector<8x128xf32>
    %10 = vector.broadcast %0 : vector<1x128xf32> to vector<8x128xf32>
    %11 = arith.addf %9, %10 : vector<8x128xf32>
    %cst_10 = arith.constant 0.000000e+00 : f32
    %12 = vector.broadcast %cst_10 : f32 to vector<8x128xf32>
    %13 = arith.maximumf %11, %12 : vector<8x128xf32>
    %14 = arith.truncf %13 : vector<8x128xf32> to vector<8x128xbf16>
    %c0_11 = arith.constant 0 : index
    %c0_12 = arith.constant 0 : index
    %15 = vector.load %arg3[%c0_11, %c0_12] : memref<128x64xbf16, #tpu.memory_space<vmem>>, vector<128x64xbf16>
    %cst_13 = arith.constant dense<0.000000e+00> : vector<8x64xf32>
    %16 = tpu.matmul %14, %15, %cst_13 {dimension_numbers = #tpu.dot_dimension_numbers<[1], [0], [0], [1], [0, 0, 1, 1], [], []>} : vector<8x128xbf16>, vector<128x64xbf16>, vector<8x64xf32> -> vector<8x64xf32>
    %17 = vector.broadcast %1 : vector<1x64xf32> to vector<8x64xf32>
    %18 = arith.addf %16, %17 : vector<8x64xf32>
    %cst_14 = arith.constant 0.000000e+00 : f32
    %19 = vector.broadcast %cst_14 : f32 to vector<8x64xf32>
    %20 = arith.maximumf %18, %19 : vector<8x64xf32>
    %21 = arith.truncf %20 : vector<8x64xf32> to vector<8x64xbf16>
    %c0_15 = arith.constant 0 : index
    %c0_16 = arith.constant 0 : index
    %22 = vector.load %arg4[%c0_15, %c0_16] : memref<64x128xbf16, #tpu.memory_space<vmem>>, vector<64x128xbf16>
    %cst_17 = arith.constant dense<0.000000e+00> : vector<8x128xf32>
    %23 = tpu.matmul %21, %22, %cst_17 {dimension_numbers = #tpu.dot_dimension_numbers<[1], [0], [0], [1], [0, 0, 1, 1], [], []>} : vector<8x64xbf16>, vector<64x128xbf16>, vector<8x128xf32> -> vector<8x128xf32>
    %24 = vector.broadcast %2 : vector<1x128xf32> to vector<8x128xf32>
    %25 = arith.addf %23, %24 : vector<8x128xf32>
    %cst_18 = arith.constant 0.000000e+00 : f32
    %26 = vector.broadcast %cst_18 : f32 to vector<8x128xf32>
    %27 = arith.maximumf %25, %26 : vector<8x128xf32>
    %28 = arith.truncf %27 : vector<8x128xf32> to vector<8x128xbf16>
    %c0_19 = arith.constant 0 : index
    %c0_20 = arith.constant 0 : index
    %29 = vector.load %arg5[%c0_19, %c0_20] : memref<128x64xbf16, #tpu.memory_space<vmem>>, vector<128x64xbf16>
    %cst_21 = arith.constant dense<0.000000e+00> : vector<8x64xf32>
    %30 = tpu.matmul %28, %29, %cst_21 {dimension_numbers = #tpu.dot_dimension_numbers<[1], [0], [0], [1], [0, 0, 1, 1], [], []>} : vector<8x128xbf16>, vector<128x64xbf16>, vector<8x64xf32> -> vector<8x64xf32>
    %31 = vector.broadcast %3 : vector<1x64xf32> to vector<8x64xf32>
    %32 = arith.addf %30, %31 : vector<8x64xf32>
    %cst_22 = arith.constant 0.000000e+00 : f32
    %33 = vector.broadcast %cst_22 : f32 to vector<8x64xf32>
    %34 = arith.maximumf %32, %33 : vector<8x64xf32>
    %35 = vector.broadcast %4 : vector<1x64xf32> to vector<8x64xf32>
    %36 = arith.mulf %34, %35 : vector<8x64xf32>
    %cst_23 = arith.constant dense<0.000000e+00> : vector<8xf32>
    %37 = vector.multi_reduction <add>, %36, %cst_23 [1] : vector<8x64xf32> to vector<8xf32>
    %38 = vector.shape_cast %37 : vector<8xf32> to vector<8x1xf32>
    %39 = vector.broadcast %5 : vector<1x1xf32> to vector<8x1xf32>
    %40 = arith.addf %38, %39 : vector<8x1xf32>
    %cst_24 = arith.constant 0.000000e+00 : f32
    %41 = vector.broadcast %cst_24 : f32 to vector<8x63xf32>
    %42 = tpu.concatenate %20, %40, %41 in 1 : vector<8x64xf32>, vector<8x1xf32>, vector<8x63xf32> -> vector<8x128xf32>
    %c0_25 = arith.constant 0 : index
    %c0_26 = arith.constant 0 : index
    %43 = vector.load %arg7[%c0_25, %c0_26] : memref<8x128xf32, #tpu.memory_space<vmem>>, vector<8x128xf32>
    tpu.vector_store %arg7[%c0_25, %c0_26], %42 {strides = array<i32>} : memref<8x128xf32, #tpu.memory_space<vmem>>, vector<8x128xf32>,
    return
  }
  func.func @transform_0(%arg0: i32) -> (i32, i32) {
    %c0_i32 = arith.constant 0 : i32
    %c0_i32_0 = arith.constant 0 : i32
    return %arg0, %c0_i32 : i32, i32
  }
  func.func @transform_1(%arg0: i32) -> (i32, i32) {
    %c0_i32 = arith.constant 0 : i32
    %c0_i32_0 = arith.constant 0 : i32
    %c0_i32_1 = arith.constant 0 : i32
    return %c0_i32, %c0_i32_0 : i32, i32
  }
  func.func @transform_2(%arg0: i32) -> (i32, i32) {
    %c0_i32 = arith.constant 0 : i32
    %c0_i32_0 = arith.constant 0 : i32
    %c0_i32_1 = arith.constant 0 : i32
    return %c0_i32, %c0_i32_0 : i32, i32
  }
  func.func @transform_3(%arg0: i32) -> (i32, i32) {
    %c0_i32 = arith.constant 0 : i32
    %c0_i32_0 = arith.constant 0 : i32
    %c0_i32_1 = arith.constant 0 : i32
    return %c0_i32, %c0_i32_0 : i32, i32
  }
  func.func @transform_4(%arg0: i32) -> (i32, i32) {
    %c0_i32 = arith.constant 0 : i32
    %c0_i32_0 = arith.constant 0 : i32
    %c0_i32_1 = arith.constant 0 : i32
    return %c0_i32, %c0_i32_0 : i32, i32
  }
  func.func @transform_5(%arg0: i32) -> (i32, i32) {
    %c0_i32 = arith.constant 0 : i32
    %c0_i32_0 = arith.constant 0 : i32
    %c0_i32_1 = arith.constant 0 : i32
    return %c0_i32, %c0_i32_0 : i32, i32
  }
  func.func @transform_6(%arg0: i32) -> (i32, i32) {
    %c0_i32 = arith.constant 0 : i32
    %c0_i32_0 = arith.constant 0 : i32
    return %arg0, %c0_i32 : i32, i32
  }
}

</mosaic_0001>

<bundles_post_ra>
// kernel: tpu_custom_call.1
= control target key start
LH: loop header
LB: loop body
LE: loop exit
PB: predicated region body
PF: predicated region fallthrough
CT: control target
= control target key end

     0   :  { %v601_v1 = vmov 0.0   ;;  %vm602_vm0 = vmmov 0   ;;  %vm53_vm1 = vcmask 261120   ;;  %s772_s0 = inlined_call_operand.vmem [shape: f32[8,32], index: 0, kind: input, shape index: {}]   ;;  %s773_s1 = inlined_call_operand.vmem [shape: bf16[32,128], index: 1, kind: input, shape index: {}]   ;;  %s774_s2 = inlined_call_operand.vmem [shape: bf16[128,64], index: 2, kind: input, shape index: {}]   ;;  %s775_s3 = inlined_call_operand.vmem [shape: bf16[64,128], index: 3, kind: input, shape index: {}]   ;;  %s776_s4 = inlined_call_operand.vmem [shape: bf16[128,64], index: 4, kind: input, shape index: {}]   ;;  %s777_s5 = inlined_call_operand.vmem [shape: f32[8,128], index: 5, kind: input, shape index: {}]   ;;  %s778_s6 = inlined_call_operand.hbm [shape: f32[8,128], index: 6, kind: output, shape index: {}]  }
   0x1   :  { %v555_v0 = vld [vmem:[%s773_s1] sm:$0xff]   ;;  %491 = vmatprep.subr.bf16.mxu1 %v601_v1  ;;  %v556_v2 = vld [vmem:[%s773_s1 + $0x8] sm:$0xff]   ;;  %519 = vmatprep.subr.bf16.mxu0 %v601_v1  ;;  %v559_v7 = vld [vmem:[%s774_s2 + $0x10] sm:$0xff]  }
   0x2   :  { %492 = vmatpush3.bf16.msra.mxu1 %v555_v0  ;;  %495 = vmatprep.mubr.msk.bf16.mxu1 %vm602_vm0, %v601_v1  ;;  %v31_v3 = vld [vmem:[%s772_s0] sm:$0xff]  ;;  %v558_v6 = vld [vmem:[%s774_s2 + $0x8] sm:$0xff]   ;;  %v560_v8 = vld [vmem:[%s774_s2 + $0x18] sm:$0xff]  }
   0x3   :  { %493 = vmatprep.subr.bf16.mxu1 %v601_v1  ;;  %527 = vmatprep.mubr.msk.bf16.mxu0 %vm602_vm0, %v601_v1  ;;  %v32_v4 = vpack.c.bf16 %v31_v3, %v31_v3  ;;  %v557_v5 = vld [vmem:[%s774_s2] sm:$0xff]  }
   0x6   :  { %494 = vmatpush3.bf16.msra.mxu1 %v556_v2 }
   0x7   :  { %499 = vmatprep.subr.bf16.mxu1 %v601_v1 }
   0x9   :  { %496 = vmatmul.mubr.msk.bf16.vlgmr.msra.gmra.mrb[0].mxu1 %vm53_vm1, %v32_v4 }
   0xa   :  { %500 = vmatpush3.bf16.msra.mxu1 %v557_v5  ;;  %515 = vmatprep.mubr.msk.bf16.mxu1 %vm602_vm0, %v601_v1 }
   0xb   :  { %501 = vmatprep.subr.bf16.mxu1 %v601_v1 }
   0xe   :  { %502 = vmatpush3.bf16.msra.mxu1 %v558_v6 }
   0xf   :  { %503 = vmatprep.subr.bf16.mxu1 %v601_v1 }
  0x12   :  { %504 = vmatpush3.bf16.msra.mxu1 %v559_v7 }
  0x13   :  { %11 = vsyncpa [#allocation3], 0  ;;  %505 = vmatprep.subr.bf16.mxu1 %v601_v1  ;;  %v561_v9 = vld [vmem:[%s774_s2 + $0x20] sm:$0xff]   ;;  %v562_v10 = vld [vmem:[%s774_s2 + $0x28] sm:$0xff]   ;;  %vm245_vm2 = vcmask 523264   ;;  %s603_s23 = smov 64  }
  0x14   :  { %v563_v11 = vld [vmem:[%s774_s2 + $0x30] sm:$0xff]   ;;  %v564_v12 = vld [vmem:[%s774_s2 + $0x38] sm:$0xff]   ;;  %v565_v13 = vld [vmem:[%s775_s3] sm:$0xff]   ;;  %s604_s24 = smov [#allocation2]   ;;  %vm418_vm3 = vcmask 531456  }
  0x15   :  { %520 = vmatpush3.bf16.msra.mxu0 %v565_v13  ;;  %v566_v14 = vld [vmem:[%s775_s3 + $0x8] sm:$0xff]   ;;  %v435_v15 = vld [vmem:[%s777_s5] ss:$0 sm:$0xff]  ;;  %v567_v23 = vld [vmem:[%s775_s3 + $0x10] sm:$0xff]   ;;  %s427_s25 = sshll.u32 %s604_s24, 4  ;;  %s428_s25 = int_to_ptr.vmem [resolvable:$true] %s427_s25 }
  0x16   :  { %506 = vmatpush3.bf16.msra.mxu1 %v560_v8  ;;  %521 = vmatprep.subr.bf16.mxu0 %v601_v1  ;;  %v568_v24 = vld [vmem:[%s775_s3 + $0x18] sm:$0xff]   ;;  %v439_v25 = vld [vmem:[%s777_s5 + $0x1] ss:$0 sm:$0xff]  ;;  %v570_v34 = vld [vmem:[%s776_s4 + $0x8] sm:$0xff]   ;;  %s577_s26 = scalar_lea.vmem %s428_s25, 128  ;;  %p582_p1 = scmp.lt.s32.totalorder %s428_s25, %s428_s25 }
  0x17   :  { %507 = vmatprep.subr.bf16.mxu1 %v601_v1  ;;  %v569_v32 = vld [vmem:[%s776_s4] sm:$0xff]   ;;  %v571_v35 = vld [vmem:[%s776_s4 + $0x10] sm:$0xff]   ;;  %v572_v36 = vld [vmem:[%s776_s4 + $0x18] sm:$0xff]   ;;  %p578_p0 = scmp.ne.s32.totalorder %s428_s25, %s577_s26  ;;  %p583_p2 = scmp.lt.s32.totalorder %s577_s26, %s577_s26 }
  0x18   :  { %v573_v37 = vld [vmem:[%s776_s4 + $0x20] sm:$0xff]   ;;  %v574_v38 = vld [vmem:[%s776_s4 + $0x28] sm:$0xff]   ;;  %v575_v39 = vld [vmem:[%s776_s4 + $0x30] sm:$0xff]  }
  0x19   :  { %522 = vmatpush3.bf16.msra.mxu0 %v566_v14  ;;  %v576_v40 = vld [vmem:[%s776_s4 + $0x38] sm:$0xff]   ;;  %v448_v41 = vld [vmem:[%s777_s5 + $0x2] ss:$0 sm:$0xff]  ;;  %v454_v49 = vld [vmem:[%s777_s5 + $0x3] ss:$0 sm:$0xff]  ;;  %p584_p3 = por %p583_p2, %p582_p1 }
  0x1a   :  { %508 = vmatpush3.bf16.msra.mxu1 %v561_v9  ;;  %523 = vmatprep.subr.bf16.mxu0 %v601_v1  ;;  %v463_v54 = vld [vmem:[%s777_s5 + $0x4] ss:$0 sm:$0xff]  ;;  %v464_v59 = vld [vmem:[%s777_s5 + $0x5] ss:$0 sm:$0xff] }
  0x1b   :  { %509 = vmatprep.subr.bf16.mxu1 %v601_v1  ;;  %p585_p4 = pnand %p584_p3, %p578_p0 }
  0x1d   :  { %524 = vmatpush3.bf16.msra.mxu0 %v567_v23 }
  0x1e   :  { %510 = vmatpush3.bf16.msra.mxu1 %v562_v10  ;;  %525 = vmatprep.subr.bf16.mxu0 %v601_v1 }
  0x1f   :  { %511 = vmatprep.subr.bf16.mxu1 %v601_v1 }
  0x21   :  { %526 = vmatpush3.bf16.msra.mxu0 %v568_v24 }
  0x22   :  { %512 = vmatpush3.bf16.msra.mxu1 %v563_v11  ;;  %531 = vmatprep.subr.bf16.mxu0 %v601_v1 }
  0x23   :  { %513 = vmatprep.subr.bf16.mxu1 %v601_v1 }
  0x26   :  { %514 = vmatpush3.bf16.msra.mxu1 %v564_v12 }
  0xdc   :  { %v91_v16 = vpop.f32.mrb[0].mxu1 }
  0xdd   :  { %v92_v17 = vadd.f32 %v435_v15, %v91_v16  ;;  %v497_v18 = vpop.f32.mrb[1].mxu1 }
  0xde   :  { %v94_v19 = vpop.f32.mrb[2].mxu1 }
  0xdf   :  { %v97_v20 = vmax.f32 %v92_v17, 0.0  ;;  %v498_v21 = vpop.f32.mrb[3].mxu1 }
  0xe1   :  { %v98_v22 = vpack.c.bf16 %v97_v20, %v97_v20 }
  0xe3   :  { %516 = vmatmul.mubr.bf16.vlgmr.msra.gmra.mrb[4].mxu1 %v98_v22 }
 0x1b6   :  { %v201_v26 = vpop.f32.mrb[4].mxu1 }
 0x1b7   :  { %v202_v27 = vadd.f32 %v439_v25, %v201_v26  ;;  %v517_v28 = vpop.f32.mrb[5].mxu1 }
 0x1b8   :  { %v204_v29 = vpop.f32.mrb[6].mxu1 }
 0x1b9   :  { %v207_v30 = vmax.f32 %v202_v27, 0.0  ;;  %v518_v31 = vpop.f32.mrb[7].mxu1 }
 0x1bb   :  { %v208_v33 = vpack.c.bf16 %v207_v30, %v207_v30 }
 0x1bd   :  { %528 = vmatmul.mubr.msk.bf16.vlgmr.msra.gmra.mrb[0].mxu0 %vm245_vm2, %v208_v33 }
 0x1be   :  { %532 = vmatpush3.bf16.msra.mxu0 %v569_v32  ;;  %547 = vmatprep.mubr.msk.bf16.mxu0 %vm602_vm0, %v601_v1 }
 0x1bf   :  { %533 = vmatprep.subr.bf16.mxu0 %v601_v1 }
 0x1c2   :  { %534 = vmatpush3.bf16.msra.mxu0 %v570_v34 }
 0x1c3   :  { %535 = vmatprep.subr.bf16.mxu0 %v601_v1 }
 0x1c6   :  { %536 = vmatpush3.bf16.msra.mxu0 %v571_v35 }
 0x1c7   :  { %537 = vmatprep.subr.bf16.mxu0 %v601_v1 }
 0x1ca   :  { %538 = vmatpush3.bf16.msra.mxu0 %v572_v36 }
 0x1cb   :  { %539 = vmatprep.subr.bf16.mxu0 %v601_v1 }
 0x1ce   :  { %540 = vmatpush3.bf16.msra.mxu0 %v573_v37 }
 0x1cf   :  { %541 = vmatprep.subr.bf16.mxu0 %v601_v1 }
 0x1d2   :  { %542 = vmatpush3.bf16.msra.mxu0 %v574_v38 }
 0x1d3   :  { %543 = vmatprep.subr.bf16.mxu0 %v601_v1 }
 0x1d6   :  { %544 = vmatpush3.bf16.msra.mxu0 %v575_v39 }
 0x1d7   :  { %545 = vmatprep.subr.bf16.mxu0 %v601_v1 }
 0x1da   :  { %546 = vmatpush3.bf16.msra.mxu0 %v576_v40 }
 0x290   :  { %v283_v42 = vpop.f32.mrb[0].mxu0 }
 0x291   :  { %v284_v43 = vadd.f32 %v448_v41, %v283_v42  ;;  %v529_v44 = vpop.f32.mrb[1].mxu0 }
 0x292   :  { %v286_v45 = vpop.f32.mrb[2].mxu0 }
 0x293   :  { %v289_v46 = vmax.f32 %v284_v43, 0.0  ;;  %v530_v47 = vpop.f32.mrb[3].mxu0 }
 0x295   :  { %v290_v48 = vpack.c.bf16 %v289_v46, %v289_v46 }
 0x297   :  { %548 = vmatmul.mubr.bf16.vlgmr.msra.gmra.mrb[4].mxu0 %v290_v48 }
 0x36a   :  { %v393_v50 = vpop.f32.mrb[4].mxu0 }
 0x36b   :  { %v394_v51 = vadd.f32 %v454_v49, %v393_v50  ;;  %v549_v52 = vpop.f32.mrb[5].mxu0 }
 0x36c   :  { %v396_v53 = vpop.f32.mrb[6].mxu0 }
 0x36d   :  { %v399_v55 = vmax.f32 %v394_v51, 0.0  ;;  %v550_v56 = vpop.f32.mrb[7].mxu0 }
 0x36f   :  { %v404_v57 = vmul.f32 %v463_v54, %v399_v55 }
 0x371   :  { %v405_v58 = vsel %vm245_vm2, %v404_v57, 0.0 }
 0x372   :  { %406 = vadd.xlane.f32.xlu0 %v405_v58 }
 0x3ff   :  { %v407_v60 = vpop.xlane.xlu0 %406 }
 0x400   :  { %v412_v61 = vadd.f32 %v464_v59, %v407_v60 }
 0x402   :  { %414 = vrot.lane.b32.xlu0 %v412_v61, %s603_s23 }
 0x474   :  { %v415_v62 = vpop.permute.xlu0 %414 }
 0x475   :  { %v417_v63 = vsel %vm245_vm2, %v207_v30, %v415_v62 }
 0x476   :  { %v419_v0 = vsel %vm418_vm3, %v417_v63, 0.0 }
 0x477   :  { %420 = vst [vmem:[#allocation2] sm:$0xff] %v419_v0 }
 0x478   :  { %588 = shalt.err (!%p585_p4)
}
 0x479   :  { %s589_s27 = scalar_lea.hbm %s778_s6, 128 }
 0x47a   :  { %p590_p5 = scmp.ne.s32.totalorder %s778_s6, %s589_s27  ;;  %p593_p6 = scmp.lt.u32.totalorder %s589_s27, %s778_s6 }
 0x47c   :  { %p595_p7 = pnand %p593_p6, %p590_p5 }
 0x47e   :  { %598 = shalt.err (!%p595_p7)
}
 0x47f   :  { %430 = dma.vmem_to_hbm [thread:$0]  %s428_s25, 128, %s778_s6, [#allocation3]  }
 0x480   :  { %599 = dma.done.wait [#allocation3], 128  }
 0x481   :  { %600 = vsyncadd [#allocation3], 4294967168 }
 0x482   :  { %434 = vsyncpa [#allocation3], 1 }

</bundles_post_ra>
